<compile_context>
chip_gen: v7x
topology: tpu7x:2x2x1
jax: 0.10.0
libtpu: 0.0.40
codegen_flags: <defaults>
</compile_context>

<pallas_src>
import jax
import jax.numpy as jnp
from jax.experimental import pallas as pl
from jax.experimental.pallas import tpu as pltpu


_LANE_CANDIDATES = (8192, 4096, 2048, 1024, 512, 256, 128)


def _pick_lane(total):
    """Largest 128-multiple lane width that divides `total` (free reshape)."""
    for lane in _LANE_CANDIDATES:
        if total % lane == 0:
            return lane
    return None


def _vmem_capacity_bytes():
    try:
        info = pltpu.get_tpu_info()
        cap = getattr(info, "vmem_capacity_bytes", None)
        if cap:
            return int(cap)
    except Exception:
        pass
    return 64 << 20  # conservative default: v7x physical VMEM per TensorCore


def _make_rhs_kernel(pointwise_fns, n_ext):
    """Kernel specialized on the fused pointwise terms + # external terms."""
    has_soln = len(pointwise_fns) > 0
    n_in = (1 if has_soln else 0) + n_ext

    def kernel(*refs):
        out_ref = refs[n_in]
        acc = None
        base = 0
        if has_soln:
            x = refs[0][...]                    # soln tile, read once
            base = 1
            for fn in pointwise_fns:
                t = fn(x).astype(jnp.float32)   # fused elementwise term
                acc = t if acc is None else acc + t
        for i in range(n_ext):
            t = refs[base + i][...].astype(jnp.float32)
            acc = t if acc is None else acc + t
        out_ref[...] = acc.astype(out_ref.dtype)

    return kernel


def rhs_forward_pallas(soln, pointwise_fns, ext_terms, *, min_pallas_bytes=4 << 20):
    """result = sum(pointwise_fns applied to soln) + sum(ext_terms)."""
    out_dtype = soln.dtype
    orig_shape = soln.shape

    if not pointwise_fns and not ext_terms:
        return jnp.zeros_like(soln)

    # Fast path: a single externally-computed term IS the whole RHS.
    if not pointwise_fns and len(ext_terms) == 1:
        return ext_terms[0].astype(out_dtype)

    total = int(soln.size)
    lane = _pick_lane(total)
    nbytes = total * soln.dtype.itemsize
    if lane is None or nbytes < min_pallas_bytes:
        # Tiny inputs / non-128-factorable shapes: plain XLA fuses everything
        # with the sum for free in this regime (matches original semantics).
        acc = jnp.zeros_like(soln)
        for fn in pointwise_fns:
            acc = acc + fn(soln).astype(out_dtype)
        for t in ext_terms:
            acc = acc + t.astype(out_dtype)
        return acc

    rows = total // lane
    has_soln = len(pointwise_fns) > 0
    n_inputs = (1 if has_soln else 0) + len(ext_terms)
    n_arrays = n_inputs + 1  # + output

    # ---- tile sizing from the VMEM budget ---------------------------------
    cap = _vmem_capacity_bytes()
    vmem_limit = max(32 << 20, min(cap - (16 << 20), 100 << 20))
    block_budget = vmem_limit - (8 << 20)                 # Mosaic scratch headroom
    tile_rows = block_budget // (2 * n_arrays * lane * 4)  # double-buffered, f32-sized
    tile_rows = min(tile_rows, (8 << 20) // (lane * 4))    # cap any block at 8 MiB
    tile_rows = max(8, (tile_rows // 8) * 8)
    if rows >= 16:
        # Keep >= 2 "parallel" grid steps so both v7x TensorCores get work.
        half = -(-rows // 2)
        half = -(-half // 8) * 8
        tile_rows = min(tile_rows, half)
    if tile_rows >= rows:
        tile_rows = rows                                   # full-dim block is allowed
    grid = (pl.cdiv(rows, tile_rows),)

    spec = pl.BlockSpec((tile_rows, lane), lambda r: (r, 0))

    inputs_2d = []
    if has_soln:
        inputs_2d.append(soln.reshape(rows, lane))          # free reshape, no pad
    for t in ext_terms:
        inputs_2d.append(t.reshape(rows, lane))

    out2d = pl.pallas_call(
        _make_rhs_kernel(tuple(pointwise_fns), len(ext_terms)),
        out_shape=jax.ShapeDtypeStruct((rows, lane), out_dtype),
        grid_spec=pl.GridSpec(
            grid=grid,
            in_specs=[spec] * n_inputs,
            out_specs=spec,
        ),
        compiler_params=pltpu.CompilerParams(
            dimension_semantics=("parallel",),
            vmem_limit_bytes=int(vmem_limit),
        ),
    )(*inputs_2d)

    return out2d.reshape(orig_shape)                         # free reshape, no slice


class PointwiseTerm:
    """Marks a component as a purely elementwise function of soln so the RHS
    kernel can fuse it (computed on the VMEM tile; soln read from HBM once)."""

    def __init__(self, fn):
        self.fn = fn

    def __call__(self, soln):
        return self.fn(soln)


class RHS:
    """JAX/Pallas port of the PyTorch RHS module (forward pass only)."""

    def __init__(self, split_integrate=False, integrator=None,
                 advection=None, reaction=None, diffusion=None, force=None,
                 min_pallas_bytes=4 << 20):
        # TODO(synk): integrator / split_integrate / non_split_integrate /
        # toggle_use_nn / get_use_nn_status are control plumbing around
        # external submodules with no tensor compute to port.
        self.advection = advection
        self.reaction = reaction
        self.diffusion = diffusion
        self.force = force
        self.integrator = integrator
        self.min_pallas_bytes = min_pallas_bytes

    def forward(self, soln):
        # `if self.xxx:` in PyTorch is static Python truthiness -> specialize
        # on exactly the present components (no flags, no zero placeholders).
        components = [c for c in (self.advection, self.reaction,
                                  self.diffusion, self.force) if c is not None]
        if not components:
            return jnp.zeros_like(soln)
        pointwise_fns = [c.fn for c in components if isinstance(c, PointwiseTerm)]
        ext_terms = [c(soln) for c in components if not isinstance(c, PointwiseTerm)]
        return rhs_forward_pallas(soln, pointwise_fns, ext_terms,
                                  min_pallas_bytes=self.min_pallas_bytes)

    __call__ = forward


# --- synthetic, deterministic component callables (stand-ins for the external
#     advection / reaction / diffusion / force submodules) ------------------
def _advection_fn(x):
    return -0.5 * x


def _reaction_fn(x):
    return x * (1.0 - x)


def _diffusion_term(soln):
    # Non-local stencil (wraps across tile boundaries) -> kept external and
    # streamed into the kernel as an already-materialized term.
    return 0.1 * (jnp.roll(soln, 1, axis=-1) + jnp.roll(soln, -1, axis=-1)
                  + jnp.roll(soln, 1, axis=-2) + jnp.roll(soln, -1, axis=-2)
                  - 4.0 * soln)


if __name__ == "__main__":
    B, C, H, W = 2, 4, 16, 16
    key = jax.random.PRNGKey(0)
    soln = jax.random.normal(key, (B, C, H, W), dtype=jnp.float32)

    # force=None exercises the "component missing" static specialization;
    # min_pallas_bytes=0 forces the Pallas path at this small demo size.
    rhs = RHS(advection=PointwiseTerm(_advection_fn),
              reaction=PointwiseTerm(_reaction_fn),
              diffusion=_diffusion_term,
              force=None,
              min_pallas_bytes=0)

    out = jax.block_until_ready(rhs(soln))

    # reference (plain JAX) check of the forward semantics
    ref = jnp.zeros_like(soln)
    ref = ref + _advection_fn(soln)
    ref = ref + _reaction_fn(soln)
    ref = ref + _diffusion_term(soln)

    assert out.shape == soln.shape and out.dtype == soln.dtype
    assert jnp.allclose(out, ref, atol=1e-5, rtol=1e-5)

    # exercise the no-component and single-external-term fast paths too
    assert jnp.array_equal(RHS()(soln), jnp.zeros_like(soln))
    only_diff = jax.block_until_ready(RHS(diffusion=_diffusion_term)(soln))
    assert jnp.allclose(only_diff, _diffusion_term(soln), atol=1e-6, rtol=1e-6)

    print("KERNEL_OK")
</pallas_src>

<mosaic_0001>
module attributes {stable_mosaic.version = 11 : i64} {
  func.func @kernel(%arg0: i32, %arg1: memref<1x2048xf32, #tpu.memory_space<vmem>>, %arg2: memref<1x2048xf32, #tpu.memory_space<vmem>>, %arg3: memref<1x2048xf32, #tpu.memory_space<vmem>>) attributes {dimension_semantics = [#tpu.dimension_semantics<parallel>], iteration_bounds = array<i64: 1>, scalar_prefetch = 0 : i64, scratch_operands = 0 : i64, tpu.core_type = #tpu.core_type<tc>, window_params = [{transform_indices = @transform_0, window_bounds = array<i64: 1, 2048>}, {transform_indices = @transform_1, window_bounds = array<i64: 1, 2048>}, {transform_indices = @transform_2, window_bounds = array<i64: 1, 2048>}]} {
    %c0 = arith.constant 0 : index
    %c0_0 = arith.constant 0 : index
    %0 = vector.load %arg1[%c0, %c0_0] : memref<1x2048xf32, #tpu.memory_space<vmem>>, vector<1x2048xf32>
    %cst = arith.constant -5.000000e-01 : f32
    %1 = vector.broadcast %cst : f32 to vector<1x2048xf32>
    %2 = arith.mulf %1, %0 : vector<1x2048xf32>
    %cst_1 = arith.constant 1.000000e+00 : f32
    %3 = vector.broadcast %cst_1 : f32 to vector<1x2048xf32>
    %4 = arith.subf %3, %0 : vector<1x2048xf32>
    %5 = arith.mulf %0, %4 : vector<1x2048xf32>
    %6 = arith.addf %2, %5 : vector<1x2048xf32>
    %c0_2 = arith.constant 0 : index
    %c0_3 = arith.constant 0 : index
    %7 = vector.load %arg2[%c0_2, %c0_3] : memref<1x2048xf32, #tpu.memory_space<vmem>>, vector<1x2048xf32>
    %8 = arith.addf %6, %7 : vector<1x2048xf32>
    %c0_4 = arith.constant 0 : index
    %c0_5 = arith.constant 0 : index
    %9 = vector.load %arg3[%c0_4, %c0_5] : memref<1x2048xf32, #tpu.memory_space<vmem>>, vector<1x2048xf32>
    tpu.vector_store %arg3[%c0_4, %c0_5], %8 {strides = array<i32>} : memref<1x2048xf32, #tpu.memory_space<vmem>>, vector<1x2048xf32>,
    return
  }
  func.func @transform_0(%arg0: i32) -> (i32, i32) {
    %c0_i32 = arith.constant 0 : i32
    %c0_i32_0 = arith.constant 0 : i32
    return %arg0, %c0_i32 : i32, i32
  }
  func.func @transform_1(%arg0: i32) -> (i32, i32) {
    %c0_i32 = arith.constant 0 : i32
    %c0_i32_0 = arith.constant 0 : i32
    return %arg0, %c0_i32 : i32, i32
  }
  func.func @transform_2(%arg0: i32) -> (i32, i32) {
    %c0_i32 = arith.constant 0 : i32
    %c0_i32_0 = arith.constant 0 : i32
    return %arg0, %c0_i32 : i32, i32
  }
}

</mosaic_0001>

<bundles_post_ra>
// kernel: tpu_custom_call.1
= control target key start
LH: loop header
LB: loop body
LE: loop exit
PB: predicated region body
PF: predicated region fallthrough
CT: control target
= control target key end

     0   :  { %7 = vsyncpa [#allocation3], 0  ;;  %s197_s0 = inlined_call_operand.hbm [shape: f32[1,2048], index: 0, kind: input, shape index: {}]   ;;  %s198_s1 = inlined_call_operand.hbm [shape: f32[1,2048], index: 1, kind: input, shape index: {}]   ;;  %s199_s2 = inlined_call_operand.hbm [shape: f32[1,2048], index: 2, kind: output, shape index: {}]  }
   0x1   :  { %8 = vsyncpa [#allocation6], 0 }
   0x2   :  { %9 = vsyncpa [#allocation4], 0  ;;  %s143_s9 = smov [#allocation2]   ;;  %s144_s11 = smov [#allocation5]  }
   0x3   :  { %s16_s10 = sshll.u32 %s143_s9, 4  ;;  %s26_s12 = sshll.u32 %s144_s11, 4  ;;  %s17_s10 = int_to_ptr.vmem [resolvable:$true] %s16_s10  ;;  %s27_s12 = int_to_ptr.vmem [resolvable:$true] %s26_s12 }
   0x4   :  { %s71_s15 = scalar_lea.hbm %s197_s0, 256 }
   0x5   :  { %p72_p0 = scmp.ne.s32.totalorder %s197_s0, %s71_s15  ;;  %p75_p1 = scmp.lt.u32.totalorder %s71_s15, %s197_s0 }
   0x7   :  { %p77_p2 = pnand %p75_p1, %p72_p0 }
   0x9   :  { %80 = shalt.err (!%p77_p2)
}
   0xa   :  { %s81_s20 = scalar_lea.vmem %s17_s10, 256  ;;  %p86_p4 = scmp.lt.s32.totalorder %s17_s10, %s17_s10 }
   0xb   :  { %p82_p3 = scmp.ne.s32.totalorder %s17_s10, %s81_s20  ;;  %p87_p5 = scmp.lt.s32.totalorder %s81_s20, %s81_s20 }
   0xd   :  { %p88_p6 = por %p87_p5, %p86_p4 }
   0xf   :  { %p89_p7 = pnand %p88_p6, %p82_p3 }
  0x11   :  { %92 = shalt.err (!%p89_p7)
}
  0x12   :  { %19 = dma.hbm_to_vmem [thread:$0]  %s197_s0, 256, %s17_s10, [#allocation3]  }
  0x13   :  { %s93_s25 = scalar_lea.hbm %s198_s1, 256 }
  0x14   :  { %p94_p8 = scmp.ne.s32.totalorder %s198_s1, %s93_s25  ;;  %p97_p9 = scmp.lt.u32.totalorder %s93_s25, %s198_s1 }
  0x16   :  { %p99_p10 = pnand %p97_p9, %p94_p8 }
  0x18   :  { %102 = shalt.err (!%p99_p10)
}
  0x19   :  { %s103_s30 = scalar_lea.vmem %s27_s12, 256  ;;  %p108_p12 = scmp.lt.s32.totalorder %s27_s12, %s27_s12 }
  0x1a   :  { %p104_p11 = scmp.ne.s32.totalorder %s27_s12, %s103_s30  ;;  %p109_p13 = scmp.lt.s32.totalorder %s103_s30, %s103_s30 }
  0x1c   :  { %p110_p0 = por %p109_p13, %p108_p12 }
  0x1e   :  { %p111_p1 = pnand %p110_p0, %p104_p11 }
  0x20   :  { %114 = shalt.err (!%p111_p1)
}
  0x21   :  { %29 = dma.hbm_to_vmem [thread:$0]  %s198_s1, 256, %s27_s12, [#allocation6]  }
  0x22   :  { %137 = dma.done.wait [#allocation3], 256  }
  0x23   :  { %138 = vsyncadd [#allocation3], 4294967040 }
  0x24   :  { %139 = dma.done.wait [#allocation6], 256  }
  0x25   :  { %140 = vsyncadd [#allocation6], 4294967040  ;;  %v36_v0 = vld [vmem:[#allocation2] sm:$0xff]  ;;  %v37_v1 = vld [vmem:[#allocation2 + $0x8] sm:$0xff]  ;;  %s145_s4 = smov [#allocation7]  }
  0x26   :  { %v38_v2 = vmul.f32 -0.5, %v36_v0  ;;  %v40_v3 = vsub.f32 1.0, %v36_v0  ;;  %v39_v4 = vmul.f32 -0.5, %v37_v1  ;;  %v41_v5 = vsub.f32 1.0, %v37_v1  ;;  %v46_v8 = vld [vmem:[#allocation5] sm:$0xff]  ;;  %v47_v9 = vld [vmem:[#allocation5 + $0x8] sm:$0xff] }
  0x27   :  { %s58_s5 = sshll.u32 %s145_s4, 4  ;;  %s59_s5 = int_to_ptr.vmem [resolvable:$true] %s58_s5 }
  0x28   :  { %v42_v6 = vmul.f32 %v40_v3, %v36_v0  ;;  %v43_v7 = vmul.f32 %v41_v5, %v37_v1  ;;  %s115_s1 = scalar_lea.vmem %s59_s5, 256  ;;  %p120_p3 = scmp.lt.s32.totalorder %s59_s5, %s59_s5 }
  0x29   :  { %p116_p2 = scmp.ne.s32.totalorder %s59_s5, %s115_s1  ;;  %p121_p4 = scmp.lt.s32.totalorder %s115_s1, %s115_s1 }
  0x2a   :  { %v44_v10 = vadd.f32 %v42_v6, %v38_v2  ;;  %v45_v11 = vadd.f32 %v43_v7, %v39_v4 }
  0x2b   :  { %p122_p5 = por %p121_p4, %p120_p3 }
  0x2c   :  { %v48_v12 = vadd.f32 %v46_v8, %v44_v10  ;;  %v49_v13 = vadd.f32 %v47_v9, %v45_v11 }
  0x2d   :  { %p123_p6 = pnand %p122_p5, %p116_p2 }
  0x2e   :  { %50 = vst [vmem:[#allocation7] sm:$0xff] %v48_v12  ;;  %51 = vst [vmem:[#allocation7 + $0x8] sm:$0xff] %v49_v13 }
  0x2f   :  { %126 = shalt.err (!%p123_p6)
}
  0x30   :  { %s127_s8 = scalar_lea.hbm %s199_s2, 256 }
  0x31   :  { %p128_p7 = scmp.ne.s32.totalorder %s199_s2, %s127_s8  ;;  %p131_p8 = scmp.lt.u32.totalorder %s127_s8, %s199_s2 }
  0x33   :  { %p133_p9 = pnand %p131_p8, %p128_p7 }
  0x35   :  { %136 = shalt.err (!%p133_p9)
}
  0x36   :  { %61 = dma.vmem_to_hbm [thread:$0]  %s59_s5, 256, %s199_s2, [#allocation4]  }
  0x37   :  { %141 = dma.done.wait [#allocation4], 256  }
  0x38   :  { %142 = vsyncadd [#allocation4], 4294967040 }
  0x39   :  { %65 = vsyncpa [#allocation3], 1 }
  0x3a   :  { %66 = vsyncpa [#allocation6], 1 }
  0x3b   :  { %67 = vsyncpa [#allocation4], 1 }

</bundles_post_ra>
